<compile_context>
chip_gen: v7x
topology: tpu7x:2x2x1
jax: 0.10.0
libtpu: 0.0.40
codegen_flags: <defaults>
</compile_context>

<pallas_src>
import functools

import jax
import jax.numpy as jnp
from jax import lax
from jax.experimental import pallas as pl
from jax.experimental.pallas import tpu as pltpu


# --------------------------------------------------------------------------------------
# Kernel
# --------------------------------------------------------------------------------------
def _mlp_classifier_kernel(x_ref, w1_ref, b1_ref, w2_ref, b2_ref, out_ref, acc_ref):
    """Grid = (batch tiles, K tiles of the first matmul's reduction dim).

    x_ref  : (tm, tk)      token-0 activations, K-slice
    w1_ref : (Hp, tk)      dense weight, PyTorch (out, in) layout, K-slice of `in`
    b1_ref : (1, Hp)       dense bias
    w2_ref : (Op, Hp)      out_proj weight, PyTorch (out, in) layout (resident)
    b2_ref : (1, Op)       out_proj bias
    out_ref: (tm, Op)      logits tile (lane-dense, written on last K step)
    acc_ref: (tm, Hp) f32  accumulator for the first matmul
    """
    k = pl.program_id(1)

    @pl.when(k == 0)
    def _init():
        acc_ref[...] = jnp.zeros_like(acc_ref)

    # Partial first matmul: x (tm, tk) @ w1 (Hp, tk)^T — contract on dim 1 of both
    # (keeps the PyTorch (out, in) weight layout; no transpose anywhere).
    acc_ref[...] += lax.dot_general(
        x_ref[...],
        w1_ref[...],
        dimension_numbers=(((1,), (1,)), ((), ())),
        preferred_element_type=jnp.float32,
    )

    @pl.when(k == pl.num_programs(1) - 1)
    def _finalize():
        # bias + ReLU in f32
        h = jnp.maximum(acc_ref[...] + b1_ref[...], 0.0)
        # TODO(synk): dropout (args.dropout) is identity at inference; training-mode
        # stochastic dropout is not implemented here.
        logits = lax.dot_general(
            h.astype(w2_ref.dtype),
            w2_ref[...],
            dimension_numbers=(((1,), (1,)), ((), ())),
            preferred_element_type=jnp.float32,
        ) + b2_ref[...]
        out_ref[...] = logits.astype(out_ref.dtype)


# --------------------------------------------------------------------------------------
# Wrapper / glue
# --------------------------------------------------------------------------------------
def _round_up(x, m):
    return ((x + m - 1) // m) * m


def _pick_tile(dim, cap, align):
    """Largest multiple of `align` that divides `dim` and is <= cap (dim % align == 0)."""
    t = min(dim, cap)
    while dim % t != 0:
        t -= align
    return t


def prepare_params(w1, b1, w2, b2):
    """One-time (model-load-time) prep: zero-pad to TPU-aligned shapes.

    Keeps PyTorch (out, in) layout — no transpose ever.
      w1: (H, H) -> (Hp, Hp),  b1: (H,) -> (1, Hp)
      w2: (O, H) -> (Op, Hp),  b2: (O,) -> (1, Op)
    """
    H = w1.shape[1]
    O = w2.shape[0]
    Hp = _round_up(H, 128)
    Op = _round_up(O, 128)
    # NOTE: for realistic sizes, cast to bfloat16 here to halve weight HBM traffic
    # (f32 accumulation in-kernel keeps accuracy); kept f32 for exact demo check.
    w1p = jnp.zeros((Hp, Hp), w1.dtype).at[:H, :H].set(w1)
    b1p = jnp.zeros((1, Hp), b1.dtype).at[0, :H].set(b1)
    w2p = jnp.zeros((Op, Hp), w2.dtype).at[:O, :H].set(w2)
    b2p = jnp.zeros((1, Op), b2.dtype).at[0, :O].set(b2)
    return w1p, b1p, w2p, b2p


@functools.partial(jax.jit, static_argnames=("out_size",))
def mlp_classifier_forward(hidden_states, w1p, b1p, w2p, b2p, *, out_size):
    """hidden_states: (B, S, H). Padded params from prepare_params. Returns (B, out_size)."""
    B, S, H = hidden_states.shape
    Hp = w1p.shape[0]
    Op = w2p.shape[0]
    O = out_size

    # Only the first token is used — never move the (B, S, H) tensor into the kernel.
    x0 = hidden_states[:, 0, :]                                        # (B, H)
    Bp = _round_up(max(B, 8), 8)
    x0p = jnp.zeros((Bp, Hp), hidden_states.dtype).at[:B, :H].set(x0)  # (Bp, Hp)

    # Tile sizes: batch tiles up to 256 rows, K-reduction tiles up to 512 (128-aligned).
    tm = _pick_tile(Bp, 256, 8)
    tk = _pick_tile(Hp, 512, 128)
    grid = (Bp // tm, Hp // tk)

    # VMEM budget: double-buffered blocks + f32 accumulator, with headroom,
    # capped below v7x's 64 MiB physical VMEM.
    itemsize = 4
    need = (
        2 * (tm * tk + Hp * tk + Hp + Op * Hp + Op + tm * Op) * itemsize
        + tm * Hp * 4
    )
    vmem_limit = min(int(need * 1.5) + (2 << 20), 48 << 20)

    out_padded = pl.pallas_call(
        _mlp_classifier_kernel,
        out_shape=jax.ShapeDtypeStruct((Bp, Op), hidden_states.dtype),
        grid=grid,
        in_specs=[
            pl.BlockSpec((tm, tk), lambda b, k: (b, k)),   # x      (token-0, K slice)
            pl.BlockSpec((Hp, tk), lambda b, k: (0, k)),   # w1     (out, in) K slice
            pl.BlockSpec((1, Hp), lambda b, k: (0, 0)),    # b1
            pl.BlockSpec((Op, Hp), lambda b, k: (0, 0)),   # w2     resident (small O)
            pl.BlockSpec((1, Op), lambda b, k: (0, 0)),    # b2
        ],
        out_specs=pl.BlockSpec((tm, Op), lambda b, k: (b, 0)),
        scratch_shapes=[pltpu.VMEM((tm, Hp), jnp.float32)],
        compiler_params=pltpu.CompilerParams(
            dimension_semantics=("parallel", "arbitrary"),  # batch || , K reduction last
            vmem_limit_bytes=vmem_limit,
        ),
    )(x0p, w1p, b1p, w2p, b2p)

    return out_padded[:B, :O]


# --------------------------------------------------------------------------------------
# Reference / demo
# --------------------------------------------------------------------------------------
def _xavier_uniform(key, shape):
    # Matches torch.nn.init.xavier_uniform_ for a 2D (fan_out, fan_in) weight.
    fan_out, fan_in = shape
    limit = jnp.sqrt(6.0 / (fan_in + fan_out))
    return jax.random.uniform(key, shape, jnp.float32, -limit, limit)


def _reference(hidden_states, w1, b1, w2, b2):
    x0 = hidden_states[:, 0]
    h = x0 @ w1.T + b1
    h = jnp.maximum(h, 0.0)
    return h @ w2.T + b2


if __name__ == "__main__":
    B, S, H, O = 2, 8, 32, 4  # batch, seq, hidden(input_size), output_size

    key = jax.random.PRNGKey(0)
    k_x, k_w1, k_w2 = jax.random.split(key, 3)

    hidden_states = jax.random.normal(k_x, (B, S, H), jnp.float32)

    # LinearLayer(input_size, input_size): weight (H, H) xavier-uniform, bias zeros
    w1 = _xavier_uniform(k_w1, (H, H))
    b1 = jnp.zeros((H,), jnp.float32)
    # LinearLayer(input_size, output_size): weight (O, H) xavier-uniform, bias zeros
    w2 = _xavier_uniform(k_w2, (O, H))
    b2 = jnp.zeros((O,), jnp.float32)

    # One-time (model-load) weight prep: pad to TPU-aligned shapes, keep (out, in) layout.
    w1p, b1p, w2p, b2p = prepare_params(w1, b1, w2, b2)

    logits = mlp_classifier_forward(hidden_states, w1p, b1p, w2p, b2p, out_size=O)
    logits = jax.block_until_ready(logits)

    ref = _reference(hidden_states, w1, b1, w2, b2)
    assert logits.shape == (B, O)
    assert jnp.allclose(logits, ref, atol=1e-5, rtol=1e-5), "mismatch vs reference"

    print("KERNEL_OK")
</pallas_src>

<mosaic_0001>
module attributes {stable_mosaic.version = 11 : i64} {
  func.func @_mlp_classifier_kernel(%arg0: i32, %arg1: i32, %arg2: memref<8x128xf32, #tpu.memory_space<vmem>>, %arg3: memref<128x128xf32, #tpu.memory_space<vmem>>, %arg4: memref<1x128xf32, #tpu.memory_space<vmem>>, %arg5: memref<128x128xf32, #tpu.memory_space<vmem>>, %arg6: memref<1x128xf32, #tpu.memory_space<vmem>>, %arg7: memref<8x128xf32, #tpu.memory_space<vmem>>, %arg8: memref<8x128xf32, #tpu.memory_space<vmem>>) attributes {dimension_semantics = [#tpu.dimension_semantics<parallel>, #tpu.dimension_semantics<arbitrary>], iteration_bounds = array<i64: 1, 1>, scalar_prefetch = 0 : i64, scratch_operands = 1 : i64, tpu.core_type = #tpu.core_type<tc>, window_params = [{transform_indices = @transform_0, window_bounds = array<i64: 8, 128>}, {transform_indices = @transform_1, window_bounds = array<i64: 128, 128>}, {pipeline_mode = #tpu.pipeline_mode<synchronous>, transform_indices = @transform_2, window_bounds = array<i64: 1, 128>}, {pipeline_mode = #tpu.pipeline_mode<synchronous>, transform_indices = @transform_3, window_bounds = array<i64: 128, 128>}, {pipeline_mode = #tpu.pipeline_mode<synchronous>, transform_indices = @transform_4, window_bounds = array<i64: 1, 128>}, {transform_indices = @transform_5, window_bounds = array<i64: 8, 128>}]} {
    %c0_i32 = arith.constant 0 : i32
    %0 = arith.cmpi eq, %arg1, %c0_i32 : i32
    %1 = arith.extui %0 : i1 to i32
    %c0_i32_0 = arith.constant 0 : i32
    %2 = arith.cmpi ne, %1, %c0_i32_0 : i32
    scf.if %2 {
      %cst_10 = arith.constant 0.000000e+00 : f32
      %12 = vector.broadcast %cst_10 : f32 to vector<8x128xf32>
      %c0_11 = arith.constant 0 : index
      %c0_12 = arith.constant 0 : index
      %13 = vector.load %arg8[%c0_11, %c0_12] : memref<8x128xf32, #tpu.memory_space<vmem>>, vector<8x128xf32>
      tpu.vector_store %arg8[%c0_11, %c0_12], %12 {strides = array<i32>} : memref<8x128xf32, #tpu.memory_space<vmem>>, vector<8x128xf32>,
    } else {
    }
    %c0 = arith.constant 0 : index
    %c0_1 = arith.constant 0 : index
    %3 = vector.load %arg8[%c0, %c0_1] : memref<8x128xf32, #tpu.memory_space<vmem>>, vector<8x128xf32>
    %c0_2 = arith.constant 0 : index
    %c0_3 = arith.constant 0 : index
    %4 = vector.load %arg2[%c0_2, %c0_3] : memref<8x128xf32, #tpu.memory_space<vmem>>, vector<8x128xf32>
    %c0_4 = arith.constant 0 : index
    %c0_5 = arith.constant 0 : index
    %5 = vector.load %arg3[%c0_4, %c0_5] : memref<128x128xf32, #tpu.memory_space<vmem>>, vector<128x128xf32>
    %cst = arith.constant dense<0.000000e+00> : vector<8x128xf32>
    %6 = tpu.matmul %4, %5, %cst {dimension_numbers = #tpu.dot_dimension_numbers<[1], [1], [0], [0], [0, 0, 1, 0], [], []>} : vector<8x128xf32>, vector<128x128xf32>, vector<8x128xf32> -> vector<8x128xf32>
    %7 = arith.addf %3, %6 : vector<8x128xf32>
    %c0_6 = arith.constant 0 : index
    %c0_7 = arith.constant 0 : index
    %8 = vector.load %arg8[%c0_6, %c0_7] : memref<8x128xf32, #tpu.memory_space<vmem>>, vector<8x128xf32>
    tpu.vector_store %arg8[%c0_6, %c0_7], %7 {strides = array<i32>} : memref<8x128xf32, #tpu.memory_space<vmem>>, vector<8x128xf32>,
    %c0_i32_8 = arith.constant 0 : i32
    %9 = arith.cmpi eq, %arg1, %c0_i32_8 : i32
    %10 = arith.extui %9 : i1 to i32
    %c0_i32_9 = arith.constant 0 : i32
    %11 = arith.cmpi ne, %10, %c0_i32_9 : i32
    scf.if %11 {
      %c0_10 = arith.constant 0 : index
      %c0_11 = arith.constant 0 : index
      %12 = vector.load %arg8[%c0_10, %c0_11] : memref<8x128xf32, #tpu.memory_space<vmem>>, vector<8x128xf32>
      %c0_12 = arith.constant 0 : index
      %c0_13 = arith.constant 0 : index
      %13 = vector.load %arg4[%c0_12, %c0_13] : memref<1x128xf32, #tpu.memory_space<vmem>>, vector<1x128xf32>
      %14 = vector.broadcast %13 : vector<1x128xf32> to vector<8x128xf32>
      %15 = arith.addf %12, %14 : vector<8x128xf32>
      %cst_14 = arith.constant 0.000000e+00 : f32
      %16 = vector.broadcast %cst_14 : f32 to vector<8x128xf32>
      %17 = arith.maximumf %15, %16 : vector<8x128xf32>
      %c0_15 = arith.constant 0 : index
      %c0_16 = arith.constant 0 : index
      %18 = vector.load %arg5[%c0_15, %c0_16] : memref<128x128xf32, #tpu.memory_space<vmem>>, vector<128x128xf32>
      %cst_17 = arith.constant dense<0.000000e+00> : vector<8x128xf32>
      %19 = tpu.matmul %17, %18, %cst_17 {dimension_numbers = #tpu.dot_dimension_numbers<[1], [1], [0], [0], [0, 0, 1, 0], [], []>} : vector<8x128xf32>, vector<128x128xf32>, vector<8x128xf32> -> vector<8x128xf32>
      %c0_18 = arith.constant 0 : index
      %c0_19 = arith.constant 0 : index
      %20 = vector.load %arg6[%c0_18, %c0_19] : memref<1x128xf32, #tpu.memory_space<vmem>>, vector<1x128xf32>
      %21 = vector.broadcast %20 : vector<1x128xf32> to vector<8x128xf32>
      %22 = arith.addf %19, %21 : vector<8x128xf32>
      %c0_20 = arith.constant 0 : index
      %c0_21 = arith.constant 0 : index
      %23 = vector.load %arg7[%c0_20, %c0_21] : memref<8x128xf32, #tpu.memory_space<vmem>>, vector<8x128xf32>
      tpu.vector_store %arg7[%c0_20, %c0_21], %22 {strides = array<i32>} : memref<8x128xf32, #tpu.memory_space<vmem>>, vector<8x128xf32>,
    } else {
    }
    return
  }
  func.func @transform_0(%arg0: i32, %arg1: i32) -> (i32, i32) {
    %c0_i32 = arith.constant 0 : i32
    return %arg0, %arg1 : i32, i32
  }
  func.func @transform_1(%arg0: i32, %arg1: i32) -> (i32, i32) {
    %c0_i32 = arith.constant 0 : i32
    %c0_i32_0 = arith.constant 0 : i32
    return %c0_i32, %arg1 : i32, i32
  }
  func.func @transform_2(%arg0: i32, %arg1: i32) -> (i32, i32) {
    %c0_i32 = arith.constant 0 : i32
    %c0_i32_0 = arith.constant 0 : i32
    %c0_i32_1 = arith.constant 0 : i32
    return %c0_i32, %c0_i32_0 : i32, i32
  }
  func.func @transform_3(%arg0: i32, %arg1: i32) -> (i32, i32) {
    %c0_i32 = arith.constant 0 : i32
    %c0_i32_0 = arith.constant 0 : i32
    %c0_i32_1 = arith.constant 0 : i32
    return %c0_i32, %c0_i32_0 : i32, i32
  }
  func.func @transform_4(%arg0: i32, %arg1: i32) -> (i32, i32) {
    %c0_i32 = arith.constant 0 : i32
    %c0_i32_0 = arith.constant 0 : i32
    %c0_i32_1 = arith.constant 0 : i32
    return %c0_i32, %c0_i32_0 : i32, i32
  }
  func.func @transform_5(%arg0: i32, %arg1: i32) -> (i32, i32) {
    %c0_i32 = arith.constant 0 : i32
    %c0_i32_0 = arith.constant 0 : i32
    return %arg0, %c0_i32 : i32, i32
  }
}

</mosaic_0001>

<bundles_post_ra>
// kernel: mlp_classifier_forward.1
= control target key start
LH: loop header
LB: loop body
LE: loop exit
PB: predicated region body
PF: predicated region fallthrough
CT: control target
= control target key end

     0   :  { %10 = vsyncpa [#allocation4], 0  ;;  %s554_s0 = inlined_call_operand.vmem [shape: f32[8,128], index: 0, kind: input, shape index: {}]   ;;  %s555_s1 = inlined_call_operand.hbm [shape: f32[128,128], index: 1, kind: input, shape index: {}]   ;;  %s556_s2 = inlined_call_operand.vmem [shape: f32[1,128], index: 2, kind: input, shape index: {}]   ;;  %s557_s3 = inlined_call_operand.hbm [shape: f32[128,128], index: 3, kind: input, shape index: {}]   ;;  %s558_s4 = inlined_call_operand.vmem [shape: f32[1,128], index: 4, kind: input, shape index: {}]   ;;  %s559_s5 = inlined_call_operand.vmem [shape: f32[8,128], index: 5, kind: output, shape index: {}]  }
   0x1   :  { %11 = vsyncpa [#allocation6], 0  ;;  %s465_s18 = smov [#allocation3]   ;;  %s417_s22 = scalar_lea.hbm %s555_s1, 2048 }
   0x2   :  { %s19_s19 = sshll.u32 %s465_s18, 4  ;;  %p418_p0 = scmp.ne.s32.totalorder %s555_s1, %s417_s22  ;;  %s20_s19 = int_to_ptr.vmem [resolvable:$true] %s19_s19 }
   0x3   :  { %p421_p1 = scmp.lt.u32.totalorder %s417_s22, %s555_s1 }
   0x5   :  { %p423_p2 = pnand %p421_p1, %p418_p0 }
   0x7   :  { %426 = shalt.err (!%p423_p2)
}
   0x8   :  { %s427_s27 = scalar_lea.vmem %s20_s19, 2048  ;;  %p432_p4 = scmp.lt.s32.totalorder %s20_s19, %s20_s19 }
   0x9   :  { %p428_p3 = scmp.ne.s32.totalorder %s20_s19, %s427_s27  ;;  %p433_p5 = scmp.lt.s32.totalorder %s427_s27, %s427_s27 }
   0xb   :  { %p434_p6 = por %p433_p5, %p432_p4 }
   0xd   :  { %p435_p7 = pnand %p434_p6, %p428_p3 }
   0xf   :  { %438 = shalt.err (!%p435_p7)
}
  0x10   :  { %s466_s28 = smov 128   ;;  %s467_s29 = smov 8  }
  0x11   :  { %25 = dma.hbm_to_vmem [thread:$0]  %s555_s1, 2048, %s20_s19, [#allocation4], %s466_s28, %s466_s28, %s467_s29  }
  0x12   :  { %s468_s7 = smov [#allocation5]   ;;  %s439_s11 = scalar_lea.hbm %s557_s3, 2048 }
  0x13   :  { %s33_s8 = sshll.u32 %s468_s7, 4  ;;  %p440_p8 = scmp.ne.s32.totalorder %s557_s3, %s439_s11  ;;  %s34_s8 = int_to_ptr.vmem [resolvable:$true] %s33_s8 }
  0x14   :  { %p443_p9 = scmp.lt.u32.totalorder %s439_s11, %s557_s3 }
  0x16   :  { %p445_p10 = pnand %p443_p9, %p440_p8 }
  0x18   :  { %448 = shalt.err (!%p445_p10)
}
  0x19   :  { %s449_s16 = scalar_lea.vmem %s34_s8, 2048  ;;  %p454_p12 = scmp.lt.s32.totalorder %s34_s8, %s34_s8 }
  0x1a   :  { %p450_p11 = scmp.ne.s32.totalorder %s34_s8, %s449_s16  ;;  %p455_p13 = scmp.lt.s32.totalorder %s449_s16, %s449_s16 }
  0x1c   :  { %p456_p0 = por %p455_p13, %p454_p12 }
  0x1e   :  { %p457_p1 = pnand %p456_p0, %p450_p11 }
  0x20   :  { %460 = shalt.err (!%p457_p1)
}
  0x21   :  { %39 = dma.hbm_to_vmem [thread:$0]  %s557_s3, 2048, %s34_s8, [#allocation6], %s466_s28, %s466_s28, %s467_s29  }
  0x22   :  { %461 = dma.done.wait [#allocation4], 2048  }
  0x23   :  { %462 = vsyncadd [#allocation4], 4294965248 }
  0x24   :  { %463 = dma.done.wait [#allocation6], 2048  }
  0x25   :  { %464 = vsyncadd [#allocation6], 4294965248  ;;  %v469_v0 = vmov 0.0|0.0   ;;  %vm470_vm0 = vmmov 0   ;;  %v471_v1 = vmov 0.0   ;;  %v55_v2 = vld [vmem:[#allocation3] sm:$0xff] }
  0x26   :  { %362 = vmatprep.subr.bf16.mxu0 %v469_v0  ;;  %324 = vmatprep.mubr.msk.f32.mxu0 %vm470_vm0, %v471_v1  ;;  %v56_v3 = vld [vmem:[#allocation3 + $0x8] sm:$0xff]  ;;  %v57_v5 = vld [vmem:[#allocation3 + $0x10] sm:$0xff]  ;;  %v58_v6 = vld [vmem:[#allocation3 + $0x18] sm:$0xff] }
  0x27   :  { %386 = vmatprep.subr.bf16.mxu1 %v469_v0  ;;  %359 = vmatprep.mubr.msk.f32.mxu1 %vm470_vm0, %v471_v1  ;;  %v363_v4 = vpack.c.bf16 %v56_v3, %v55_v2  ;;  %v156_v7 = vld [vmem:[#allocation5] sm:$0xff]  ;;  %v157_v8 = vld [vmem:[#allocation5 + $0x8] sm:$0xff]  ;;  %v366_v9 = vpack.c.bf16 %v58_v6, %v57_v5  ;;  %v158_v11 = vld [vmem:[#allocation5 + $0x10] sm:$0xff] }
  0x28   :  { %v387_v10 = vpack.c.bf16 %v157_v8, %v156_v7  ;;  %v159_v12 = vld [vmem:[#allocation5 + $0x18] sm:$0xff]  ;;  %v59_v13 = vld [vmem:[#allocation3 + $0x20] sm:$0xff]  ;;  %v60_v14 = vld [vmem:[#allocation3 + $0x28] sm:$0xff] }
  0x29   :  { %364 = vmatpush3.bf16.xpose.msra.mxu0 %v363_v4  ;;  %v390_v15 = vpack.c.bf16 %v159_v12, %v158_v11  ;;  %v369_v16 = vpack.c.bf16 %v60_v14, %v59_v13  ;;  %v160_v17 = vld [vmem:[#allocation5 + $0x20] sm:$0xff]  ;;  %v161_v18 = vld [vmem:[#allocation5 + $0x28] sm:$0xff]  ;;  %v61_v19 = vld [vmem:[#allocation3 + $0x30] sm:$0xff] }
  0x2a   :  { %365 = vmatprep.subr.bf16.mxu0 %v469_v0  ;;  %388 = vmatpush3.bf16.xpose.msra.mxu1 %v387_v10  ;;  %v62_v20 = vld [vmem:[#allocation3 + $0x38] sm:$0xff]  ;;  %v393_v21 = vpack.c.bf16 %v161_v18, %v160_v17  ;;  %v162_v23 = vld [vmem:[#allocation5 + $0x30] sm:$0xff]  ;;  %v63_v25 = vld [vmem:[#allocation3 + $0x40] sm:$0xff] }
  0x2b   :  { %389 = vmatprep.subr.bf16.mxu1 %v469_v0  ;;  %v372_v22 = vpack.c.bf16 %v62_v20, %v61_v19  ;;  %v163_v24 = vld [vmem:[#allocation5 + $0x38] sm:$0xff]  ;;  %v64_v26 = vld [vmem:[#allocation3 + $0x48] sm:$0xff]  ;;  %v164_v29 = vld [vmem:[#allocation5 + $0x40] sm:$0xff] }
  0x2c   :  { %v396_v27 = vpack.c.bf16 %v163_v24, %v162_v23  ;;  %v375_v28 = vpack.c.bf16 %v64_v26, %v63_v25  ;;  %v165_v30 = vld [vmem:[#allocation5 + $0x48] sm:$0xff]  ;;  %v65_v31 = vld [vmem:[#allocation3 + $0x50] sm:$0xff]  ;;  %v66_v32 = vld [vmem:[#allocation3 + $0x58] sm:$0xff] }
  0x2d   :  { %v399_v33 = vpack.c.bf16 %v165_v30, %v164_v29  ;;  %v378_v34 = vpack.c.bf16 %v66_v32, %v65_v31  ;;  %v166_v35 = vld [vmem:[#allocation5 + $0x50] sm:$0xff]  ;;  %v167_v36 = vld [vmem:[#allocation5 + $0x58] sm:$0xff]  ;;  %v67_v37 = vld [vmem:[#allocation3 + $0x60] sm:$0xff] }
  0x2e   :  { %v68_v38 = vld [vmem:[#allocation3 + $0x68] sm:$0xff]  ;;  %v402_v39 = vpack.c.bf16 %v167_v36, %v166_v35  ;;  %v168_v41 = vld [vmem:[#allocation5 + $0x60] sm:$0xff]  ;;  %v69_v43 = vld [vmem:[#allocation3 + $0x70] sm:$0xff] }
  0x2f   :  { %v381_v40 = vpack.c.bf16 %v68_v38, %v67_v37  ;;  %v169_v42 = vld [vmem:[#allocation5 + $0x68] sm:$0xff]  ;;  %v70_v44 = vld [vmem:[#allocation3 + $0x78] sm:$0xff]  ;;  %v170_v47 = vld [vmem:[#allocation5 + $0x70] sm:$0xff] }
  0x30   :  { %v405_v45 = vpack.c.bf16 %v169_v42, %v168_v41  ;;  %v384_v46 = vpack.c.bf16 %v70_v44, %v69_v43  ;;  %v171_v48 = vld [vmem:[#allocation5 + $0x78] sm:$0xff]  ;;  %v54_v50 = vld [vmem:[%s554_s0] sm:$0xff] }
  0x31   :  { %367 = vmatpush3.bf16.xpose.msra.mxu0 %v366_v9  ;;  %v408_v49 = vpack.c.bf16 %v171_v48, %v170_v47  ;;  %v256_v51 = vld [vmem:[%s556_s2] ss:$0 sm:$0xff] }
  0x32   :  { %368 = vmatprep.subr.bf16.mxu0 %v469_v0  ;;  %391 = vmatpush3.bf16.xpose.msra.mxu1 %v390_v15  ;;  %v257_v56 = vld [vmem:[%s558_s4] ss:$0 sm:$0xff] }
  0x33   :  { %392 = vmatprep.subr.bf16.mxu1 %v469_v0 }
  0x39   :  { %370 = vmatpush3.bf16.xpose.msra.mxu0 %v369_v16 }
  0x3a   :  { %371 = vmatprep.subr.bf16.mxu0 %v469_v0  ;;  %394 = vmatpush3.bf16.xpose.msra.mxu1 %v393_v21 }
  0x3b   :  { %395 = vmatprep.subr.bf16.mxu1 %v469_v0 }
  0x41   :  { %373 = vmatpush3.bf16.xpose.msra.mxu0 %v372_v22 }
  0x42   :  { %374 = vmatprep.subr.bf16.mxu0 %v469_v0  ;;  %397 = vmatpush3.bf16.xpose.msra.mxu1 %v396_v27 }
  0x43   :  { %398 = vmatprep.subr.bf16.mxu1 %v469_v0 }
  0x49   :  { %376 = vmatpush3.bf16.xpose.msra.mxu0 %v375_v28 }
  0x4a   :  { %377 = vmatprep.subr.bf16.mxu0 %v469_v0  ;;  %400 = vmatpush3.bf16.xpose.msra.mxu1 %v399_v33 }
  0x4b   :  { %401 = vmatprep.subr.bf16.mxu1 %v469_v0 }
  0x51   :  { %379 = vmatpush3.bf16.xpose.msra.mxu0 %v378_v34 }
  0x52   :  { %380 = vmatprep.subr.bf16.mxu0 %v469_v0  ;;  %403 = vmatpush3.bf16.xpose.msra.mxu1 %v402_v39 }
  0x53   :  { %404 = vmatprep.subr.bf16.mxu1 %v469_v0 }
  0x59   :  { %382 = vmatpush3.bf16.xpose.msra.mxu0 %v381_v40 }
  0x5a   :  { %383 = vmatprep.subr.bf16.mxu0 %v469_v0  ;;  %406 = vmatpush3.bf16.xpose.msra.mxu1 %v405_v45 }
  0x5b   :  { %407 = vmatprep.subr.bf16.mxu1 %v469_v0 }
  0x61   :  { %385 = vmatpush3.bf16.xpose.msra.mxu0 %v384_v46 }
  0x62   :  { %409 = vmatpush3.bf16.xpose.msra.mxu1 %v408_v49 }
  0x68   :  { %325 = vmatmul.mubr.f32.vlgmr.msra.gmra.mrb[0].mxu0 %v54_v50 }
 0x13b   :  { %v137_v52 = vpop.f32.mrb[0].mxu0 }
 0x13c   :  { %v154_v53 = vadd.f32 %v256_v51, %v137_v52  ;;  %v326_v54 = vpop.f32.mrb[1].mxu0 }
 0x13e   :  { %v155_v55 = vmax.f32 %v154_v53, 0.0 }
 0x140   :  { %360 = vmatmul.mubr.f32.vlgmr.msra.gmra.mrb[0].mxu1 %v155_v55 }
 0x213   :  { %v245_v57 = vpop.f32.mrb[0].mxu1 }
 0x214   :  { %v246_v58 = vadd.f32 %v257_v56, %v245_v57  ;;  %v361_v59 = vpop.f32.mrb[1].mxu1 }
 0x216   :  { %249 = vst [vmem:[%s559_s5] sm:$0xff] %v246_v58 }
 0x217   :  { %254 = vsyncpa [#allocation4], 1 }
 0x218   :  { %255 = vsyncpa [#allocation6], 1 }

</bundles_post_ra>
